<compile_context>
chip_gen: v6e
topology: v6e:2x2x1
jax: 0.10.0
libtpu: 0.0.40
codegen_flags: <defaults>
</compile_context>

<pallas_src>
import functools

import jax
import jax.numpy as jnp
from jax.experimental import pallas as pl
from jax.experimental.pallas import tpu as pltpu


def _round_up(x, m):
    return (x + m - 1) // m * m


def _vq_kernel(x_ref, cbt_ref, cb_ref, esq_ref, idx_ref, q_ref):
    # x_ref:   (TN, D) flat input tile
    # cbt_ref: (D, K)  codebook transposed (resident; used for the xe matmul)
    # cb_ref:  (K, D)  codebook (resident; used for the quantize matmul)
    # esq_ref: (1, K)  precomputed ||e||^2 (hoisted out of the body)
    x = x_ref[...]                                   # (TN, D) f32
    cb_t = cbt_ref[...]                              # (D, K)  f32
    e_sq = esq_ref[...]                              # (1, K)  f32

    # Nearest-code search.  argmin_k (||x||^2 + ||e_k||^2 - 2 x.e_k) is
    # identical to argmin_k (||e_k||^2 - 2 x.e_k) since ||x||^2 is constant
    # per row, so we skip the per-row cross-lane reduction entirely.
    xe = jnp.dot(x, cb_t, preferred_element_type=jnp.float32)   # (TN, K) MXU
    score = e_sq - 2.0 * xe                                     # (TN, K)

    idx = jnp.argmin(score, axis=1).astype(jnp.int32)           # (TN,)
    idx_ref[...] = idx[:, None]                                 # (TN, 1) int32

    # One-hot (in vregs only, never written to HBM) -> quantize matmul.
    lane_iota = jax.lax.broadcasted_iota(jnp.int32, score.shape, 1)
    enc = (lane_iota == idx[:, None]).astype(jnp.float32)       # (TN, K)
    q_ref[...] = jnp.dot(enc, cb_ref[...],
                         preferred_element_type=jnp.float32)    # (TN, D)


def vq_quantize(flat_input, codebook, *, tile_n=2048):
    """Run the Pallas VQ kernel.

    flat_input: (N, D) float32
    codebook:   (K, D) float32
    returns (indices (N,) int32, quantized (N, D) float32)
    """
    n, d = flat_input.shape
    k, d2 = codebook.shape
    assert d == d2

    # VMEM-aware tile size.  Dominant per-row VMEM: double-buffered x and q
    # tiles (2*2*D*4 B), the lane-padded double-buffered idx tile (2*128*4 B)
    # and the in-kernel (TN, K) score / one-hot temporaries (~3*K*4 B).  Keep
    # well under the 32 MiB scoped default (v7x has the smallest VMEM).
    vmem_budget = 16 * 1024 * 1024
    bytes_per_row = 4 * (4 * d + 2 * 128 + 3 * k)
    cap = max(8, (vmem_budget // bytes_per_row) // 8 * 8)
    tile_n = max(8, min(tile_n, cap, _round_up(n, 8)))

    n_pad = _round_up(n, tile_n)
    if n_pad != n:
        flat_input = jnp.pad(flat_input, ((0, n_pad - n), (0, 0)))

    # Hoisted constants (computed once in XLA, resident across grid steps).
    e_sq = jnp.sum(codebook * codebook, axis=1)[None, :]   # (1, K)
    cb_t = codebook.T                                       # (D, K)

    grid_spec = pltpu.PrefetchScalarGridSpec(
        num_scalar_prefetch=0,
        grid=(n_pad // tile_n,),
        in_specs=[
            pl.BlockSpec((tile_n, d), lambda i: (i, 0)),   # input tile
            pl.BlockSpec((d, k), lambda i: (0, 0)),        # codebook^T (resident)
            pl.BlockSpec((k, d), lambda i: (0, 0)),        # codebook   (resident)
            pl.BlockSpec((1, k), lambda i: (0, 0)),        # ||e||^2    (resident)
        ],
        out_specs=[
            pl.BlockSpec((tile_n, 1), lambda i: (i, 0)),   # code indices
            pl.BlockSpec((tile_n, d), lambda i: (i, 0)),   # quantized
        ],
    )

    idx, quant = pl.pallas_call(
        _vq_kernel,
        out_shape=(
            jax.ShapeDtypeStruct((n_pad, 1), jnp.int32),
            jax.ShapeDtypeStruct((n_pad, d), jnp.float32),
        ),
        grid_spec=grid_spec,
        compiler_params=pltpu.CompilerParams(
            # No output block is revisited across the grid axis, so it can be
            # "parallel" -> shards row tiles across both v7x TensorCores
            # (neutral on single-TC v5e/v6e).
            dimension_semantics=("parallel",),
        ),
    )(flat_input, cb_t, codebook, e_sq)

    return idx[:n, 0], quant[:n]


@functools.partial(jax.jit, static_argnames=("commitment_cost",))
def vector_quantizer_forward(inputs, codebook, commitment_cost):
    """Forward pass of VectorQuantizer.

    inputs:   (B, H, W, D) float32, D == embedding_dim
    codebook: (K, D) float32 (self.embedding.weight)
    returns (vq_loss, quantized, perplexity, encodings)
    """
    input_shape = inputs.shape
    k, d = codebook.shape
    flat_input = inputs.reshape(-1, d)

    indices, quant_flat = vq_quantize(flat_input, codebook)
    quantized = quant_flat.reshape(input_shape)

    # One-hot encodings rebuilt outside the kernel only because the module's
    # API returns them; the kernel itself never writes the (N, K) array.
    encodings = jax.nn.one_hot(indices, k, dtype=jnp.float32)

    # Losses; stop_gradient mirrors .detach() (forward values identical).
    e_latent_loss = jnp.mean((jax.lax.stop_gradient(quantized) - inputs) ** 2)
    q_latent_loss = jnp.mean((quantized - jax.lax.stop_gradient(inputs)) ** 2)
    vq_loss = q_latent_loss + commitment_cost * e_latent_loss

    # Straight-through estimator.
    quantized_st = inputs + jax.lax.stop_gradient(quantized - inputs)

    # Perplexity, exactly as in the PyTorch reference.
    avg_probs = jnp.mean(encodings, axis=0)
    perplexity = jnp.exp(-jnp.sum(avg_probs * jnp.log(avg_probs + 1e-10)))

    # TODO(synk): refit_codebook_kmeans (sklearn MiniBatchKMeans) is an
    # offline host-side codebook re-init, not part of the forward pass.
    return vq_loss, quantized_st, perplexity, encodings


if __name__ == "__main__":
    # Module hyperparameters
    codebook_size = 128      # K
    embedding_dim = 32       # D
    commitment_cost = 0.25
    codebook_init_sd = 1.0

    # Small input consistent with the module: (B, H, W, D), D = embedding_dim
    B, H, W = 2, 4, 4

    key = jax.random.PRNGKey(0)
    k_in, k_cb = jax.random.split(key)
    inputs = jax.random.normal(k_in, (B, H, W, embedding_dim), dtype=jnp.float32)
    codebook = codebook_init_sd * jax.random.normal(
        k_cb, (codebook_size, embedding_dim), dtype=jnp.float32
    )

    vq_loss, quantized, perplexity, encodings = vector_quantizer_forward(
        inputs, codebook, commitment_cost
    )
    jax.block_until_ready((vq_loss, quantized, perplexity, encodings))

    # --- sanity checks against a pure-JAX reference of the PyTorch math ---
    flat = inputs.reshape(-1, embedding_dim)
    dist_ref = (jnp.sum(flat ** 2, axis=1, keepdims=True)
                + jnp.sum(codebook ** 2, axis=1)
                - 2.0 * flat @ codebook.T)
    idx_ref = jnp.argmin(dist_ref, axis=1)
    enc_ref = jax.nn.one_hot(idx_ref, codebook_size, dtype=jnp.float32)
    quant_ref = (enc_ref @ codebook).reshape(inputs.shape)
    quant_st_ref = inputs + (quant_ref - inputs)
    avg_probs_ref = jnp.mean(enc_ref, axis=0)
    perp_ref = jnp.exp(-jnp.sum(avg_probs_ref * jnp.log(avg_probs_ref + 1e-10)))
    e_l = jnp.mean((quant_ref - inputs) ** 2)
    loss_ref = e_l + commitment_cost * e_l

    assert quantized.shape == inputs.shape
    assert encodings.shape == (B * H * W, codebook_size)
    assert bool(jnp.all(jnp.argmax(encodings, axis=1) == idx_ref))
    assert bool(jnp.allclose(jnp.sum(encodings, axis=1), 1.0))
    assert bool(jnp.allclose(quantized, quant_st_ref, rtol=1e-5, atol=1e-5))
    assert bool(jnp.allclose(perplexity, perp_ref, rtol=1e-5, atol=1e-5))
    assert bool(jnp.allclose(vq_loss, loss_ref, rtol=1e-5, atol=1e-5))
    assert bool(jnp.isfinite(vq_loss))

    print("KERNEL_OK")
</pallas_src>

<mosaic_0001>
module attributes {stable_mosaic.version = 11 : i64} {
  func.func @_vq_kernel(%arg0: i32, %arg1: memref<32x32xf32, #tpu.memory_space<vmem>>, %arg2: memref<32x128xf32, #tpu.memory_space<vmem>>, %arg3: memref<128x32xf32, #tpu.memory_space<vmem>>, %arg4: memref<1x128xf32, #tpu.memory_space<vmem>>, %arg5: memref<32x1xi32, #tpu.memory_space<vmem>>, %arg6: memref<32x32xf32, #tpu.memory_space<vmem>>) attributes {dimension_semantics = [#tpu.dimension_semantics<parallel>], iteration_bounds = array<i64: 1>, scalar_prefetch = 0 : i64, scratch_operands = 0 : i64, tpu.core_type = #tpu.core_type<tc>, window_params = [{transform_indices = @transform_0, window_bounds = array<i64: 32, 32>}, {pipeline_mode = #tpu.pipeline_mode<synchronous>, transform_indices = @transform_1, window_bounds = array<i64: 32, 128>}, {pipeline_mode = #tpu.pipeline_mode<synchronous>, transform_indices = @transform_2, window_bounds = array<i64: 128, 32>}, {pipeline_mode = #tpu.pipeline_mode<synchronous>, transform_indices = @transform_3, window_bounds = array<i64: 1, 128>}, {transform_indices = @transform_4, window_bounds = array<i64: 32, 1>}, {transform_indices = @transform_5, window_bounds = array<i64: 32, 32>}]} {
    %c0 = arith.constant 0 : index
    %c0_0 = arith.constant 0 : index
    %0 = vector.load %arg1[%c0, %c0_0] : memref<32x32xf32, #tpu.memory_space<vmem>>, vector<32x32xf32>
    %c0_1 = arith.constant 0 : index
    %c0_2 = arith.constant 0 : index
    %1 = vector.load %arg2[%c0_1, %c0_2] : memref<32x128xf32, #tpu.memory_space<vmem>>, vector<32x128xf32>
    %c0_3 = arith.constant 0 : index
    %c0_4 = arith.constant 0 : index
    %2 = vector.load %arg4[%c0_3, %c0_4] : memref<1x128xf32, #tpu.memory_space<vmem>>, vector<1x128xf32>
    %cst = arith.constant dense<0.000000e+00> : vector<32x128xf32>
    %3 = tpu.matmul %0, %1, %cst {dimension_numbers = #tpu.dot_dimension_numbers<[1], [0], [0], [1], [0, 0, 1, 1], [], []>} : vector<32x32xf32>, vector<32x128xf32>, vector<32x128xf32> -> vector<32x128xf32>
    %cst_5 = arith.constant 2.000000e+00 : f32
    %4 = vector.broadcast %cst_5 : f32 to vector<32x128xf32>
    %5 = arith.mulf %4, %3 : vector<32x128xf32>
    %6 = vector.broadcast %2 : vector<1x128xf32> to vector<32x128xf32>
    %7 = arith.subf %6, %5 : vector<32x128xf32>
    %8 = tpu.reduce_index %7 {axis = 1 : i32, kind = #tpu.reduction_kind<arg_min>} : vector<32x128xf32> -> vector<32xi32>
    %9 = vector.shape_cast %8 : vector<32xi32> to vector<32x1xi32>
    %c0_6 = arith.constant 0 : index
    %c0_7 = arith.constant 0 : index
    %10 = vector.load %arg5[%c0_6, %c0_7] : memref<32x1xi32, #tpu.memory_space<vmem>>, vector<32x1xi32>
    tpu.vector_store %arg5[%c0_6, %c0_7], %9 {strides = array<i32>} : memref<32x1xi32, #tpu.memory_space<vmem>>, vector<32x1xi32>,
    %11 = tpu.iota {dimensions = array<i32: 1>} : vector<32x128xi32>
    %12 = vector.shape_cast %8 : vector<32xi32> to vector<32x1xi32>
    %13 = vector.broadcast %12 : vector<32x1xi32> to vector<32x128xi32>
    %14 = arith.cmpi eq, %11, %13 : vector<32x128xi32>
    %15 = arith.extui %14 : vector<32x128xi1> to vector<32x128xi32>
    %16 = arith.sitofp %15 : vector<32x128xi32> to vector<32x128xf32>
    %c0_8 = arith.constant 0 : index
    %c0_9 = arith.constant 0 : index
    %17 = vector.load %arg3[%c0_8, %c0_9] : memref<128x32xf32, #tpu.memory_space<vmem>>, vector<128x32xf32>
    %cst_10 = arith.constant dense<0.000000e+00> : vector<32x32xf32>
    %18 = tpu.matmul %16, %17, %cst_10 {dimension_numbers = #tpu.dot_dimension_numbers<[1], [0], [0], [1], [0, 0, 1, 1], [], []>} : vector<32x128xf32>, vector<128x32xf32>, vector<32x32xf32> -> vector<32x32xf32>
    %c0_11 = arith.constant 0 : index
    %c0_12 = arith.constant 0 : index
    %19 = vector.load %arg6[%c0_11, %c0_12] : memref<32x32xf32, #tpu.memory_space<vmem>>, vector<32x32xf32>
    tpu.vector_store %arg6[%c0_11, %c0_12], %18 {strides = array<i32>} : memref<32x32xf32, #tpu.memory_space<vmem>>, vector<32x32xf32>,
    return
  }
  func.func @transform_0(%arg0: i32) -> (i32, i32) {
    %c0_i32 = arith.constant 0 : i32
    %c0_i32_0 = arith.constant 0 : i32
    return %arg0, %c0_i32 : i32, i32
  }
  func.func @transform_1(%arg0: i32) -> (i32, i32) {
    %c0_i32 = arith.constant 0 : i32
    %c0_i32_0 = arith.constant 0 : i32
    %c0_i32_1 = arith.constant 0 : i32
    return %c0_i32, %c0_i32_0 : i32, i32
  }
  func.func @transform_2(%arg0: i32) -> (i32, i32) {
    %c0_i32 = arith.constant 0 : i32
    %c0_i32_0 = arith.constant 0 : i32
    %c0_i32_1 = arith.constant 0 : i32
    return %c0_i32, %c0_i32_0 : i32, i32
  }
  func.func @transform_3(%arg0: i32) -> (i32, i32) {
    %c0_i32 = arith.constant 0 : i32
    %c0_i32_0 = arith.constant 0 : i32
    %c0_i32_1 = arith.constant 0 : i32
    return %c0_i32, %c0_i32_0 : i32, i32
  }
  func.func @transform_4(%arg0: i32) -> (i32, i32) {
    %c0_i32 = arith.constant 0 : i32
    %c0_i32_0 = arith.constant 0 : i32
    return %arg0, %c0_i32 : i32, i32
  }
  func.func @transform_5(%arg0: i32) -> (i32, i32) {
    %c0_i32 = arith.constant 0 : i32
    %c0_i32_0 = arith.constant 0 : i32
    return %arg0, %c0_i32 : i32, i32
  }
}

</mosaic_0001>

<bundles_post_ra>
// kernel: vector_quantizer_forward.1
= control target key start
LH: loop header
LB: loop body
LE: loop exit
PB: predicated region body
PF: predicated region fallthrough
CT: control target
= control target key end

     0   :  { %vm28_vm0 = vcmask 261120   ;;  %v153_v37 = vlaneseq  ;;  %vm148_vm1 = vcmask 7168   ;;  %v374_v40 = vmov 1.0   ;;  %s512_s1 = inlined_call_operand.vmem [shape: f32[32,128], index: 1, kind: input, shape index: {}]   ;;  %s513_s0 = inlined_call_operand.vmem [shape: f32[32,32], index: 0, kind: input, shape index: {}]   ;;  %s514_s2 = inlined_call_operand.vmem [shape: f32[128,32], index: 2, kind: input, shape index: {}]   ;;  %s515_s3 = inlined_call_operand.vmem [shape: f32[1,128], index: 3, kind: input, shape index: {}]   ;;  %s516_s4 = inlined_call_operand.vmem [shape: s32[32,1], index: 4, kind: output, shape index: {0}]   ;;  %s517_s5 = inlined_call_operand.vmem [shape: f32[32,32], index: 5, kind: output, shape index: {1}]  }
   0x1   :  { %v26_v0 = vld [vmem:[%s512_s1 + $0x18] sm:$0xff]  ;;  %v25_v1 = vld [vmem:[%s512_s1 + $0x10] sm:$0xff]  ;;  %v19_v2 = vld [vmem:[%s513_s0] sm:$0xff] }
   0x2   :  { %321 = vmatprep.subr.mxu0 %v26_v0  ;;  %v24_v3 = vld [vmem:[%s512_s1 + $0x8] sm:$0xff]  ;;  %329 = vmatprep.mubr.msk.f32.mxu0 %vm28_vm0, %v19_v2  ;;  %v23_v4 = vld [vmem:[%s512_s1] sm:$0xff]  ;;  %v21_v6 = vld [vmem:[%s513_s0 + $0x10] sm:$0xff]  ;;  %v154_v38 = vand.u32 127, %v153_v37 }
   0x3   :  { %322 = vmatpush3.msra.mxu0 %v26_v0  ;;  %v20_v5 = vld [vmem:[%s513_s0 + $0x8] sm:$0xff]  ;;  %v22_v7 = vld [vmem:[%s513_s0 + $0x18] sm:$0xff]  ;;  %v181_v9 = vld [vmem:[%s514_s2 + $0x70] sm:$0xff] }
   0x4   :  { %323 = vmatprep.subr.mxu0 %v25_v1  ;;  %v182_v8 = vld [vmem:[%s514_s2 + $0x78] sm:$0xff]  ;;  %v180_v10 = vld [vmem:[%s514_s2 + $0x68] sm:$0xff]  ;;  %v179_v11 = vld [vmem:[%s514_s2 + $0x60] sm:$0xff] }
   0x5   :  { %324 = vmatpush3.msra.mxu0 %v25_v1  ;;  %335 = vmatprep.subr.mxu1 %v182_v8  ;;  %v178_v12 = vld [vmem:[%s514_s2 + $0x58] sm:$0xff]  ;;  %v177_v13 = vld [vmem:[%s514_s2 + $0x50] sm:$0xff]  ;;  %v176_v14 = vld [vmem:[%s514_s2 + $0x48] sm:$0xff] }
   0x6   :  { %325 = vmatprep.subr.mxu0 %v24_v3  ;;  %336 = vmatpush3.msra.mxu1 %v182_v8  ;;  %v175_v15 = vld [vmem:[%s514_s2 + $0x40] sm:$0xff]  ;;  %v174_v16 = vld [vmem:[%s514_s2 + $0x38] sm:$0xff]  ;;  %v173_v17 = vld [vmem:[%s514_s2 + $0x30] sm:$0xff] }
   0x7   :  { %326 = vmatpush3.msra.mxu0 %v24_v3  ;;  %337 = vmatprep.subr.mxu1 %v181_v9  ;;  %v172_v18 = vld [vmem:[%s514_s2 + $0x28] sm:$0xff]  ;;  %v171_v19 = vld [vmem:[%s514_s2 + $0x20] sm:$0xff]  ;;  %v170_v20 = vld [vmem:[%s514_s2 + $0x18] sm:$0xff] }
   0x8   :  { %327 = vmatprep.subr.mxu0 %v23_v4  ;;  %338 = vmatpush3.msra.mxu1 %v181_v9  ;;  %v169_v21 = vld [vmem:[%s514_s2 + $0x10] sm:$0xff]  ;;  %v284_v26 = vld [vmem:[%s515_s3] ss:$0 sm:$0xff]  ;;  %v168_v35 = vld [vmem:[%s514_s2 + $0x8] sm:$0xff] }
   0x9   :  { %328 = vmatpush3.msra.mxu0 %v23_v4  ;;  %339 = vmatprep.subr.mxu1 %v180_v10  ;;  %v167_v36 = vld [vmem:[%s514_s2] sm:$0xff] }
   0xa   :  { %330 = vmatmul.mubr.msk.f32.vlgmr.msra.gmra.mxu0 %vm28_vm0, %v20_v5  ;;  %340 = vmatpush3.msra.mxu1 %v180_v10 }
   0xb   :  { %332 = vmatprep.mubr.msk.f32.mxu0 %vm28_vm0, %v21_v6  ;;  %341 = vmatprep.subr.mxu1 %v179_v11 }
   0xc   :  { %342 = vmatpush3.msra.mxu1 %v179_v11 }
   0xd   :  { %343 = vmatprep.subr.mxu1 %v178_v12 }
   0xe   :  { %333 = vmatmul.mubr.msk.f32.gmra.mxu0 %vm28_vm0, %v22_v7  ;;  %344 = vmatpush3.msra.mxu1 %v178_v12 }
   0xf   :  { %345 = vmatprep.subr.mxu1 %v177_v13 }
  0x10   :  { %346 = vmatpush3.msra.mxu1 %v177_v13 }
  0x11   :  { %347 = vmatprep.subr.mxu1 %v176_v14 }
  0x12   :  { %348 = vmatpush3.msra.mxu1 %v176_v14 }
  0x13   :  { %349 = vmatprep.subr.mxu1 %v175_v15 }
  0x14   :  { %350 = vmatpush3.msra.mxu1 %v175_v15 }
  0x15   :  { %351 = vmatprep.subr.mxu1 %v174_v16 }
  0x16   :  { %352 = vmatpush3.msra.mxu1 %v174_v16 }
  0x17   :  { %353 = vmatprep.subr.mxu1 %v173_v17 }
  0x18   :  { %354 = vmatpush3.msra.mxu1 %v173_v17 }
  0x19   :  { %355 = vmatprep.subr.mxu1 %v172_v18 }
  0x1a   :  { %356 = vmatpush3.msra.mxu1 %v172_v18 }
  0x1b   :  { %357 = vmatprep.subr.mxu1 %v171_v19 }
  0x1c   :  { %358 = vmatpush3.msra.mxu1 %v171_v19 }
  0x1d   :  { %359 = vmatprep.subr.mxu1 %v170_v20 }
  0x1e   :  { %360 = vmatpush3.msra.mxu1 %v170_v20 }
  0x1f   :  { %361 = vmatprep.subr.mxu1 %v169_v21 }
  0x20   :  { %362 = vmatpush3.msra.mxu1 %v169_v21 }
  0x21   :  { %363 = vmatprep.subr.mxu1 %v168_v35 }
  0x22   :  { %364 = vmatpush3.msra.mxu1 %v168_v35 }
  0x23   :  { %365 = vmatprep.subr.mxu1 %v167_v36 }
  0x24   :  { %366 = vmatpush3.msra.mxu1 %v167_v36 }
  0xca   :  { %v331_v22 = vpop.f32.mrf.mxu0 }
  0xcb   :  { %v127_v27 = vmul.f32 2.0, %v331_v22 }
  0xcc   :  { %v107_v23 = vpop.f32.mrf.mxu0 }
  0xcd   :  { %v126_v24 = vmul.f32 2.0, %v107_v23  ;;  %v137_v32 = vsub.f32 %v284_v26, %v127_v27 }
  0xce   :  { %v334_v25 = vpop.f32.mrf.mxu0 }
  0xcf   :  { %v136_v28 = vsub.f32 %v284_v26, %v126_v24  ;;  %v129_v31 = vmul.f32 2.0, %v334_v25 }
  0xd0   :  { %v117_v29 = vpop.f32.mrf.mxu0 }
  0xd1   :  { %v128_v30 = vmul.f32 2.0, %v117_v29  ;;  %140 = vmin.index.xlane.f32.xlu0 %v136_v28  ;;  %v139_v34 = vsub.f32 %v284_v26, %v129_v31 }
  0xd3   :  { %v138_v33 = vsub.f32 %v284_v26, %v128_v30 }
  0xd5   :  { %142 = vmin.index.xlane.f32.xlu0 %v137_v32  ;;  %144 = vmin.index.xlane.f32.xlu1 %v138_v33 }
  0xd9   :  { %146 = vmin.index.xlane.f32.xlu1 %v139_v34 }
 0x15a   :  { %v141_v39 = vpop.xlane.xlu0 %140 }
 0x15b   :  { %149 = vst.msk [vmem:[%s516_s4] sm:$0xff] %vm148_vm1, %v141_v39  ;;  %vm155_vm2 = vcmp.eq.s32.totalorder %v154_v38, %v141_v39 }
 0x15c   :  { %367 = vmatprep.mubr.msk.f32.mxu1 %vm155_vm2, %v374_v40 }
 0x15e   :  { %v143_v41 = vpop.xlane.xlu0 %142  ;;  %v145_v42 = vpop.xlane.xlu1 %144 }
 0x15f   :  { %150 = vst.msk [vmem:[%s516_s4 + $0x8] sm:$0xff] %vm148_vm1, %v143_v41  ;;  %vm156_vm3 = vcmp.eq.s32.totalorder %v154_v38, %v143_v41  ;;  %151 = vst.msk [vmem:[%s516_s4 + $0x10] sm:$0xff] %vm148_vm1, %v145_v42  ;;  %vm157_vm4 = vcmp.eq.s32.totalorder %v154_v38, %v145_v42 }
 0x160   :  { %368 = vmatmul.mubr.msk.f32.vlgmr.msra.gmra.mxu1 %vm156_vm3, %v374_v40 }
 0x161   :  { %370 = vmatprep.mubr.msk.f32.mxu1 %vm157_vm4, %v374_v40 }
 0x162   :  { %v147_v43 = vpop.xlane.xlu1 %146 }
 0x163   :  { %152 = vst.msk [vmem:[%s516_s4 + $0x18] sm:$0xff] %vm148_vm1, %v147_v43  ;;  %vm158_vm5 = vcmp.eq.s32.totalorder %v154_v38, %v147_v43 }
 0x164   :  { %371 = vmatmul.mubr.msk.f32.gmra.mxu1 %vm158_vm5, %v374_v40 }
 0x220   :  { %v369_v44 = vpop.f32.mrf.mxu1 }
 0x221   :  { %269 = vst.msk [vmem:[%s517_s5 + $0x8] sm:$0xff] %vm28_vm0, %v369_v44 }
 0x222   :  { %v249_v45 = vpop.f32.mrf.mxu1 }
 0x223   :  { %268 = vst.msk [vmem:[%s517_s5] sm:$0xff] %vm28_vm0, %v249_v45 }
 0x224   :  { %v372_v46 = vpop.f32.mrf.mxu1 }
 0x225   :  { %271 = vst.msk [vmem:[%s517_s5 + $0x18] sm:$0xff] %vm28_vm0, %v372_v46 }
 0x226   :  { %v259_v47 = vpop.f32.mrf.mxu1 }
 0x227   :  { %270 = vst.msk [vmem:[%s517_s5 + $0x10] sm:$0xff] %vm28_vm0, %v259_v47 }

</bundles_post_ra>
